<compile_context>
chip_gen: v7x
topology: tpu7x:2x2x1
jax: 0.10.0
libtpu: 0.0.40
codegen_flags: <defaults>
</compile_context>

<pallas_src>
import functools

import jax
import jax.numpy as jnp
from jax.experimental import pallas as pl
from jax.experimental.pallas import tpu as pltpu


def _round_up(n, m):
    return ((n + m - 1) // m) * m


def _diffusion_mlp_kernel(x_ref, w1_ref, b1_ref, w2_ref, b2_ref, w3_ref, b3_ref,
                          o_ref, *, scale, offset, input_dim):
    """Feature-major layout: activations are [features, TILE_B] (batch on lanes)."""
    x = x_ref[...]                                    # [input_dim, TILE_B]

    # ---- Layer 1: Linear(input_dim -> hidden) + ReLU ------------------------
    # K = input_dim (tiny): broadcast FMAs on the VPU instead of an MXU pass.
    h1 = w1_ref[:, 0:1] * x[0:1, :]
    for k in range(1, input_dim):
        h1 = h1 + w1_ref[:, k:k + 1] * x[k:k + 1, :]
    h1 = jnp.maximum(h1 + b1_ref[...], 0.0)           # [hidden, TILE_B]

    # ---- Layer 2: Linear(hidden -> hidden) + ReLU (MXU) ---------------------
    h2 = jnp.dot(w2_ref[...], h1, preferred_element_type=jnp.float32) + b2_ref[...]
    h2 = jnp.maximum(h2, 0.0)                         # [hidden, TILE_B]

    # ---- Layer 3: Linear(hidden -> input_dim) + Tanh (MXU, K=hidden) --------
    h3 = jnp.dot(w3_ref[...], h2, preferred_element_type=jnp.float32) + b3_ref[...]
    bounded = jnp.tanh(h3)                            # [input_dim, TILE_B]

    # ---- (bounded + 1) * 0.5 * (max - min) + min  ==  bounded*scale + offset,
    # then exp (EUP).  Lane-dense store: last dim == TILE_B (multiple of 128).
    o_ref[...] = jnp.exp(bounded * scale + offset)


def diffusion_mlp_forward(x, params, min_val=-10.0, max_val=5.0, tile_b=1024):
    """x: [B, input_dim] float32. params in PyTorch layout: w*: [out,in], b*: [out,1]."""
    w1, b1 = params["w1"], params["b1"]
    w2, b2 = params["w2"], params["b2"]
    w3, b3 = params["w3"], params["b3"]
    B, input_dim = x.shape
    hidden_dim = w1.shape[0]

    # Batch lives on the 128-lane axis -> keep the tile a multiple of 128.
    tile_b = min(tile_b, _round_up(B, 128))
    b_pad = _round_up(B, tile_b)
    grid = (b_pad // tile_b,)

    # Feature-major input; pad the batch so the grid divides evenly.
    x_t = x.T
    if b_pad != B:
        x_t = jnp.pad(x_t, ((0, 0), (0, b_pad - B)))

    scale = 0.5 * (max_val - min_val)
    offset = scale + min_val

    kernel = functools.partial(_diffusion_mlp_kernel, scale=scale, offset=offset,
                               input_dim=input_dim)

    # Weights/biases: whole-array blocks with constant index_map -> VMEM-resident,
    # DMA'd once. x/out: batch-tiled, auto double-buffered by Pallas.
    def resident(shape):
        return pl.BlockSpec(shape, lambda i: (0, 0))

    out_t = pl.pallas_call(
        kernel,
        out_shape=jax.ShapeDtypeStruct((input_dim, b_pad), jnp.float32),
        grid=grid,
        in_specs=[
            pl.BlockSpec((input_dim, tile_b), lambda i: (0, i)),   # x (batch-tiled)
            resident((hidden_dim, input_dim)),                     # w1
            resident((hidden_dim, 1)),                             # b1
            resident((hidden_dim, hidden_dim)),                    # w2
            resident((hidden_dim, 1)),                             # b2
            resident((input_dim, hidden_dim)),                     # w3
            resident((input_dim, 1)),                              # b3
        ],
        out_specs=pl.BlockSpec((input_dim, tile_b), lambda i: (0, i)),
        compiler_params=pltpu.CompilerParams(
            dimension_semantics=("parallel",)),   # batch axis shardable across TCs (v7x)
    )(x_t, w1, b1, w2, b2, w3, b3)

    return out_t[:, :B].T


def init_params(key, input_dim=2, hidden_dim=64):
    """Deterministic init mimicking nn.Linear default (uniform +/- 1/sqrt(fan_in)),
    stored in PyTorch layout: weight [out_features, in_features], bias [out_features, 1]."""
    ks = jax.random.split(key, 6)

    def linear(kw, kb, fan_in, fan_out):
        bound = 1.0 / float(fan_in) ** 0.5
        w = jax.random.uniform(kw, (fan_out, fan_in), jnp.float32, -bound, bound)
        b = jax.random.uniform(kb, (fan_out, 1), jnp.float32, -bound, bound)
        return w, b

    w1, b1 = linear(ks[0], ks[1], input_dim, hidden_dim)
    w2, b2 = linear(ks[2], ks[3], hidden_dim, hidden_dim)
    w3, b3 = linear(ks[4], ks[5], hidden_dim, input_dim)
    return {"w1": w1, "b1": b1, "w2": w2, "b2": b2, "w3": w3, "b3": b3}


def reference_forward(x, params, min_val=-10.0, max_val=5.0):
    h1 = jnp.maximum(x @ params["w1"].T + params["b1"].T, 0.0)
    h2 = jnp.maximum(h1 @ params["w2"].T + params["b2"].T, 0.0)
    bounded = jnp.tanh(h2 @ params["w3"].T + params["b3"].T)
    scaled = (bounded + 1.0) * 0.5 * (max_val - min_val) + min_val
    return jnp.exp(scaled)


if __name__ == "__main__":
    key = jax.random.PRNGKey(0)
    k_params, k_x1, k_x2 = jax.random.split(key, 3)

    input_dim, hidden_dim = 2, 64
    params = init_params(k_params, input_dim=input_dim, hidden_dim=hidden_dim)

    # Small latency-style batch (single grid step, padded to one 128-wide tile).
    x_small = jax.random.normal(k_x1, (8, input_dim), dtype=jnp.float32)
    out_small = jax.block_until_ready(diffusion_mlp_forward(x_small, params))
    ref_small = reference_forward(x_small, params)
    assert out_small.shape == x_small.shape
    assert jnp.allclose(out_small, ref_small, rtol=1e-5, atol=1e-5), "mismatch (B=8)"

    # Larger ragged batch exercising multiple grid steps + batch padding.
    x_big = jax.random.normal(k_x2, (300, input_dim), dtype=jnp.float32)
    out_big = jax.block_until_ready(
        diffusion_mlp_forward(x_big, params, tile_b=128))
    ref_big = reference_forward(x_big, params)
    assert out_big.shape == x_big.shape
    assert jnp.allclose(out_big, ref_big, rtol=1e-5, atol=1e-5), "mismatch (B=300)"

    print("KERNEL_OK")
</pallas_src>

<mosaic_0001>
module attributes {stable_mosaic.version = 11 : i64} {
  func.func @_diffusion_mlp_kernel(%arg0: i32, %arg1: memref<2x128xf32, #tpu.memory_space<vmem>>, %arg2: memref<64x2xf32, #tpu.memory_space<vmem>>, %arg3: memref<64x1xf32, #tpu.memory_space<vmem>>, %arg4: memref<64x64xf32, #tpu.memory_space<vmem>>, %arg5: memref<64x1xf32, #tpu.memory_space<vmem>>, %arg6: memref<2x64xf32, #tpu.memory_space<vmem>>, %arg7: memref<2x1xf32, #tpu.memory_space<vmem>>, %arg8: memref<2x128xf32, #tpu.memory_space<vmem>>) attributes {dimension_semantics = [#tpu.dimension_semantics<parallel>], iteration_bounds = array<i64: 1>, scalar_prefetch = 0 : i64, scratch_operands = 0 : i64, tpu.core_type = #tpu.core_type<tc>, window_params = [{transform_indices = @transform_0, window_bounds = array<i64: 2, 128>}, {pipeline_mode = #tpu.pipeline_mode<synchronous>, transform_indices = @transform_1, window_bounds = array<i64: 64, 2>}, {pipeline_mode = #tpu.pipeline_mode<synchronous>, transform_indices = @transform_2, window_bounds = array<i64: 64, 1>}, {pipeline_mode = #tpu.pipeline_mode<synchronous>, transform_indices = @transform_3, window_bounds = array<i64: 64, 64>}, {pipeline_mode = #tpu.pipeline_mode<synchronous>, transform_indices = @transform_4, window_bounds = array<i64: 64, 1>}, {pipeline_mode = #tpu.pipeline_mode<synchronous>, transform_indices = @transform_5, window_bounds = array<i64: 2, 64>}, {pipeline_mode = #tpu.pipeline_mode<synchronous>, transform_indices = @transform_6, window_bounds = array<i64: 2, 1>}, {transform_indices = @transform_7, window_bounds = array<i64: 2, 128>}]} {
    %c0 = arith.constant 0 : index
    %c0_0 = arith.constant 0 : index
    %0 = vector.load %arg1[%c0, %c0_0] : memref<2x128xf32, #tpu.memory_space<vmem>>, vector<2x128xf32>
    %c0_1 = arith.constant 0 : index
    %c0_2 = arith.constant 0 : index
    %1 = vector.load %arg2[%c0_1, %c0_2] : memref<64x2xf32, #tpu.memory_space<vmem>>, vector<64x1xf32>
    %2 = vector.extract_strided_slice %0 {offsets = [0, 0], sizes = [1, 128], strides = [1, 1]} : vector<2x128xf32> to vector<1x128xf32>
    %3 = vector.broadcast %1 : vector<64x1xf32> to vector<64x128xf32>
    %4 = vector.broadcast %2 : vector<1x128xf32> to vector<64x128xf32>
    %5 = arith.mulf %3, %4 : vector<64x128xf32>
    %c0_3 = arith.constant 0 : index
    %c1 = arith.constant 1 : index
    %6 = vector.load %arg2[%c0_3, %c1] : memref<64x2xf32, #tpu.memory_space<vmem>>, vector<64x1xf32>
    %7 = vector.extract_strided_slice %0 {offsets = [1, 0], sizes = [1, 128], strides = [1, 1]} : vector<2x128xf32> to vector<1x128xf32>
    %8 = vector.broadcast %6 : vector<64x1xf32> to vector<64x128xf32>
    %9 = vector.broadcast %7 : vector<1x128xf32> to vector<64x128xf32>
    %10 = arith.mulf %8, %9 : vector<64x128xf32>
    %11 = arith.addf %5, %10 : vector<64x128xf32>
    %c0_4 = arith.constant 0 : index
    %c0_5 = arith.constant 0 : index
    %12 = vector.load %arg3[%c0_4, %c0_5] : memref<64x1xf32, #tpu.memory_space<vmem>>, vector<64x1xf32>
    %13 = vector.broadcast %12 : vector<64x1xf32> to vector<64x128xf32>
    %14 = arith.addf %11, %13 : vector<64x128xf32>
    %cst = arith.constant 0.000000e+00 : f32
    %15 = vector.broadcast %cst : f32 to vector<64x128xf32>
    %16 = arith.maximumf %14, %15 : vector<64x128xf32>
    %c0_6 = arith.constant 0 : index
    %c0_7 = arith.constant 0 : index
    %17 = vector.load %arg4[%c0_6, %c0_7] : memref<64x64xf32, #tpu.memory_space<vmem>>, vector<64x64xf32>
    %cst_8 = arith.constant dense<0.000000e+00> : vector<64x128xf32>
    %18 = tpu.matmul %17, %16, %cst_8 {dimension_numbers = #tpu.dot_dimension_numbers<[1], [0], [0], [1], [0, 0, 1, 1], [], []>} : vector<64x64xf32>, vector<64x128xf32>, vector<64x128xf32> -> vector<64x128xf32>
    %c0_9 = arith.constant 0 : index
    %c0_10 = arith.constant 0 : index
    %19 = vector.load %arg5[%c0_9, %c0_10] : memref<64x1xf32, #tpu.memory_space<vmem>>, vector<64x1xf32>
    %20 = vector.broadcast %19 : vector<64x1xf32> to vector<64x128xf32>
    %21 = arith.addf %18, %20 : vector<64x128xf32>
    %cst_11 = arith.constant 0.000000e+00 : f32
    %22 = vector.broadcast %cst_11 : f32 to vector<64x128xf32>
    %23 = arith.maximumf %21, %22 : vector<64x128xf32>
    %c0_12 = arith.constant 0 : index
    %c0_13 = arith.constant 0 : index
    %24 = vector.load %arg6[%c0_12, %c0_13] : memref<2x64xf32, #tpu.memory_space<vmem>>, vector<2x64xf32>
    %cst_14 = arith.constant dense<0.000000e+00> : vector<2x128xf32>
    %25 = tpu.matmul %24, %23, %cst_14 {dimension_numbers = #tpu.dot_dimension_numbers<[1], [0], [0], [1], [0, 0, 1, 1], [], []>} : vector<2x64xf32>, vector<64x128xf32>, vector<2x128xf32> -> vector<2x128xf32>
    %c0_15 = arith.constant 0 : index
    %c0_16 = arith.constant 0 : index
    %26 = vector.load %arg7[%c0_15, %c0_16] : memref<2x1xf32, #tpu.memory_space<vmem>>, vector<2x1xf32>
    %27 = vector.broadcast %26 : vector<2x1xf32> to vector<2x128xf32>
    %28 = arith.addf %25, %27 : vector<2x128xf32>
    %29 = math.tanh %28 : vector<2x128xf32>
    %cst_17 = arith.constant 7.500000e+00 : f32
    %30 = vector.broadcast %cst_17 : f32 to vector<2x128xf32>
    %31 = arith.mulf %29, %30 : vector<2x128xf32>
    %cst_18 = arith.constant -2.500000e+00 : f32
    %32 = vector.broadcast %cst_18 : f32 to vector<2x128xf32>
    %33 = arith.addf %31, %32 : vector<2x128xf32>
    %34 = math.exp %33 : vector<2x128xf32>
    %c0_19 = arith.constant 0 : index
    %c0_20 = arith.constant 0 : index
    %35 = vector.load %arg8[%c0_19, %c0_20] : memref<2x128xf32, #tpu.memory_space<vmem>>, vector<2x128xf32>
    tpu.vector_store %arg8[%c0_19, %c0_20], %34 {strides = array<i32>} : memref<2x128xf32, #tpu.memory_space<vmem>>, vector<2x128xf32>,
    return
  }
  func.func @transform_0(%arg0: i32) -> (i32, i32) {
    %c0_i32 = arith.constant 0 : i32
    %c0_i32_0 = arith.constant 0 : i32
    return %c0_i32, %arg0 : i32, i32
  }
  func.func @transform_1(%arg0: i32) -> (i32, i32) {
    %c0_i32 = arith.constant 0 : i32
    %c0_i32_0 = arith.constant 0 : i32
    %c0_i32_1 = arith.constant 0 : i32
    return %c0_i32, %c0_i32_0 : i32, i32
  }
  func.func @transform_2(%arg0: i32) -> (i32, i32) {
    %c0_i32 = arith.constant 0 : i32
    %c0_i32_0 = arith.constant 0 : i32
    %c0_i32_1 = arith.constant 0 : i32
    return %c0_i32, %c0_i32_0 : i32, i32
  }
  func.func @transform_3(%arg0: i32) -> (i32, i32) {
    %c0_i32 = arith.constant 0 : i32
    %c0_i32_0 = arith.constant 0 : i32
    %c0_i32_1 = arith.constant 0 : i32
    return %c0_i32, %c0_i32_0 : i32, i32
  }
  func.func @transform_4(%arg0: i32) -> (i32, i32) {
    %c0_i32 = arith.constant 0 : i32
    %c0_i32_0 = arith.constant 0 : i32
    %c0_i32_1 = arith.constant 0 : i32
    return %c0_i32, %c0_i32_0 : i32, i32
  }
  func.func @transform_5(%arg0: i32) -> (i32, i32) {
    %c0_i32 = arith.constant 0 : i32
    %c0_i32_0 = arith.constant 0 : i32
    %c0_i32_1 = arith.constant 0 : i32
    return %c0_i32, %c0_i32_0 : i32, i32
  }
  func.func @transform_6(%arg0: i32) -> (i32, i32) {
    %c0_i32 = arith.constant 0 : i32
    %c0_i32_0 = arith.constant 0 : i32
    %c0_i32_1 = arith.constant 0 : i32
    return %c0_i32, %c0_i32_0 : i32, i32
  }
  func.func @transform_7(%arg0: i32) -> (i32, i32) {
    %c0_i32 = arith.constant 0 : i32
    %c0_i32_0 = arith.constant 0 : i32
    return %c0_i32, %arg0 : i32, i32
  }
}

</mosaic_0001>

<bundles_post_ra>
// kernel: tpu_custom_call.1
= control target key start
LH: loop header
LB: loop body
LE: loop exit
PB: predicated region body
PF: predicated region fallthrough
CT: control target
= control target key end

     0   :  { %v651_v2 = vmov 1   ;;  %s823_s0 = inlined_call_operand.vmem [shape: f32[2,128], index: 0, kind: input, shape index: {}]   ;;  %s824_s1 = inlined_call_operand.vmem [shape: f32[64,2], index: 1, kind: input, shape index: {}]   ;;  %s825_s2 = inlined_call_operand.vmem [shape: f32[64,1], index: 2, kind: input, shape index: {}]   ;;  %s826_s3 = inlined_call_operand.vmem [shape: f32[64,64], index: 3, kind: input, shape index: {}]   ;;  %s827_s4 = inlined_call_operand.vmem [shape: f32[64,1], index: 4, kind: input, shape index: {}]   ;;  %s828_s5 = inlined_call_operand.vmem [shape: f32[2,64], index: 5, kind: input, shape index: {}]   ;;  %s829_s6 = inlined_call_operand.vmem [shape: f32[2,1], index: 6, kind: input, shape index: {}]   ;;  %s830_s7 = inlined_call_operand.hbm [shape: f32[2,128], index: 7, kind: output, shape index: {}]  }
   0x1   :  { %v30_v0 = vld [vmem:[%s824_s1 + $0x10] sm:$0xff]  ;;  %v28_v1 = vld [vmem:[%s824_s1] sm:$0xff]  ;;  %615 = vset.pattern.permute.xlu0 %v651_v2  ;;  %613 = vset.pattern.permute.xlu1 %v651_v2  ;;  %v29_v4 = vld [vmem:[%s824_s1 + $0x8] sm:$0xff] }
   0x2   :  { %97 = vperm.xlu0 %615, %v30_v0   ;;  %89 = vperm.xlu1 %613, %v28_v1   ;;  %v32_v3 = vld [vmem:[%s824_s1 + $0x20] sm:$0xff]  ;;  %v34_v5 = vld [vmem:[%s824_s1 + $0x30] sm:$0xff]  ;;  %v31_v6 = vld [vmem:[%s824_s1 + $0x18] sm:$0xff] }
   0x6   :  { %105 = vperm.xlu0 %615, %v32_v3   ;;  %93 = vperm.xlu1 %613, %v29_v4  }
   0x7   :  { %12 = vsyncpa [#allocation3], 0  ;;  %v652_v7 = vmov 0   ;;  %v140_v8 = vld [vmem:[%s825_s2] sm:$0xff]  ;;  %v141_v9 = vld [vmem:[%s825_s2 + $0x8] sm:$0xff]  ;;  %vm260_vm0 = vcmask 523264   ;;  %v76_v30 = vlaneseq }
   0x8   :  { %v33_v10 = vld [vmem:[%s824_s1 + $0x28] sm:$0xff]  ;;  %v143_v11 = vld [vmem:[%s825_s2 + $0x18] sm:$0xff]  ;;  %v212_v13 = vld [vmem:[%s827_s4] sm:$0xff]  ;;  %vm654_vm1 = vmmov 0   ;;  %s656_s18 = smov [#allocation2]  }
   0x9   :  { %v145_v12 = vld [vmem:[%s825_s2 + $0x28] sm:$0xff]  ;;  %v142_v14 = vld [vmem:[%s825_s2 + $0x10] sm:$0xff]  ;;  %v216_v16 = vld [vmem:[%s827_s4 + $0x20] sm:$0xff]  ;;  %v77_v33 = vshrl.u32 %v76_v30, 7  ;;  %s490_s19 = sshll.u32 %s656_s18, 4  ;;  %s491_s19 = int_to_ptr.vmem [resolvable:$true] %s490_s19 }
   0xa   :  { %113 = vperm.xlu0 %615, %v34_v5   ;;  %614 = vset.pattern.permute.xlu1 %v652_v7  ;;  %v214_v15 = vld [vmem:[%s827_s4 + $0x10] sm:$0xff]  ;;  %v35_v17 = vld [vmem:[%s824_s1 + $0x38] sm:$0xff]  ;;  %v399_v19 = vld [vmem:[%s829_s6] sm:$0x3]  ;;  %s627_s20 = scalar_lea.vmem %s491_s19, 32  ;;  %p632_p1 = scmp.lt.s32.totalorder %s491_s19, %s491_s19 }
   0xb   :  { %53 = vperm.xlu1 %614, %v31_v6   ;;  %v218_v18 = vld [vmem:[%s827_s4 + $0x30] sm:$0xff]  ;;  %v144_v20 = vld [vmem:[%s825_s2 + $0x20] sm:$0xff]  ;;  %v147_v22 = vld [vmem:[%s825_s2 + $0x38] sm:$0xff]  ;;  %v122_v36 = vsub.s32 1, %v77_v33  ;;  %v78_v37 = vsub.s32 0, %v77_v33  ;;  %p628_p0 = scmp.ne.s32.totalorder %s491_s19, %s627_s20  ;;  %p633_p2 = scmp.lt.s32.totalorder %s627_s20, %s627_s20 }
   0xc   :  { %v146_v21 = vld [vmem:[%s825_s2 + $0x30] sm:$0xff]  ;;  %v213_v23 = vld [vmem:[%s827_s4 + $0x8] sm:$0xff]  ;;  %v215_v24 = vld [vmem:[%s827_s4 + $0x18] sm:$0xff] }
   0xd   :  { %v204_v25 = vld [vmem:[%s826_s3] sm:$0xff]  ;;  %v217_v26 = vld [vmem:[%s827_s4 + $0x28] sm:$0xff]  ;;  %v219_v27 = vld [vmem:[%s827_s4 + $0x38] sm:$0xff]  ;;  %p634_p3 = por %p633_p2, %p632_p1 }
   0xe   :  { %620 = vset.pattern.permute.xlu0 %v652_v7  ;;  %548 = vmatprep.mubr.msk.f32.mxu0 %vm260_vm0, %v204_v25  ;;  %v27_v38 = vld [vmem:[%s823_s0] sm:$0x3] }
   0xf   :  { %38 = vperm.xlu0 %620, %v28_v1   ;;  %616 = vset.pattern.permute.xlu1 %v651_v2  ;;  %v123_v41 = vrot.slane %v27_v38, %v122_v36  ;;  %v79_v42 = vrot.slane %v27_v38, %v78_v37  ;;  %p635_p4 = pnand %p634_p3, %p628_p0 }
  0x10   :  { %101 = vperm.xlu1 %616, %v31_v6  }
  0x13   :  { %43 = vperm.xlu0 %620, %v29_v4  }
  0x14   :  { %617 = vset.pattern.permute.xlu1 %v652_v7 }
  0x15   :  { %150 = vperm.xlu1 %617, %v140_v8  }
  0x17   :  { %48 = vperm.xlu0 %620, %v30_v0  }
  0x19   :  { %58 = vperm.xlu1 %617, %v32_v3  }
  0x1b   :  { %155 = vperm.xlu0 %620, %v141_v9  }
  0x1d   :  { %63 = vperm.xlu1 %617, %v33_v10  }
  0x1f   :  { %165 = vperm.xlu0 %620, %v143_v11  }
  0x21   :  { %618 = vset.pattern.permute.xlu1 %v651_v2 }
  0x22   :  { %109 = vperm.xlu1 %618, %v33_v10  }
  0x23   :  { %175 = vperm.xlu0 %620, %v145_v12  }
  0x26   :  { %619 = vset.pattern.permute.xlu1 %v652_v7 }
  0x27   :  { %222 = vperm.xlu0 %620, %v212_v13   ;;  %160 = vperm.xlu1 %619, %v142_v14  }
  0x2b   :  { %232 = vperm.xlu0 %620, %v214_v15   ;;  %68 = vperm.xlu1 %619, %v34_v5  }
  0x2f   :  { %242 = vperm.xlu0 %620, %v216_v16   ;;  %73 = vperm.xlu1 %619, %v35_v17  }
  0x33   :  { %252 = vperm.xlu0 %620, %v218_v18   ;;  %621 = vset.pattern.permute.xlu1 %v651_v2 }
  0x34   :  { %117 = vperm.xlu1 %621, %v35_v17  }
  0x37   :  { %402 = vperm.xlu0 %620, %v399_v19  }
  0x38   :  { %622 = vset.pattern.permute.xlu1 %v652_v7 }
  0x39   :  { %170 = vperm.xlu1 %622, %v144_v20  }
  0x3d   :  { %180 = vperm.xlu1 %622, %v146_v21  }
  0x41   :  { %185 = vperm.xlu1 %622, %v147_v22  }
  0x45   :  { %227 = vperm.xlu1 %622, %v213_v23  }
  0x49   :  { %237 = vperm.xlu1 %622, %v215_v24  }
  0x4d   :  { %247 = vperm.xlu1 %622, %v217_v26  }
  0x51   :  { %257 = vperm.xlu1 %622, %v219_v27  }
  0x81   :  { %v90_v28 = vpop.permute.xlu1 %89  ;;  %v98_v29 = vpop.permute.xlu0 %97 }
  0x82   :  { %v124_v46 = vmul.f32 %v123_v41, %v90_v28  ;;  %v126_v61 = vmul.f32 %v123_v41, %v98_v29 }
  0x85   :  { %v94_v31 = vpop.permute.xlu1 %93  ;;  %v106_v32 = vpop.permute.xlu0 %105 }
  0x86   :  { %v125_v49 = vmul.f32 %v123_v41, %v94_v31  ;;  %v128_v14 = vmul.f32 %v123_v41, %v106_v32 }
  0x89   :  { %v114_v34 = vpop.permute.xlu0 %113 }
  0x8a   :  { %v54_v35 = vpop.permute.xlu1 %53  ;;  %v130_v24 = vmul.f32 %v123_v41, %v114_v34  ;;  %v205_v34 = vld [vmem:[%s826_s3 + $0x8] sm:$0xff] }
  0x8b   :  { %v83_v62 = vmul.f32 %v79_v42, %v54_v35 }
  0x8e   :  { %v39_v39 = vpop.permute.xlu0 %38 }
  0x8f   :  { %v102_v40 = vpop.permute.xlu1 %101  ;;  %v80_v44 = vmul.f32 %v79_v42, %v39_v39 }
  0x90   :  { %v127_v59 = vmul.f32 %v123_v41, %v102_v40  ;;  %v206_v40 = vld [vmem:[%s826_s3 + $0x10] sm:$0xff] }
  0x91   :  { %v132_v50 = vadd.f32 %v124_v46, %v80_v44  ;;  %v210_v44 = vld [vmem:[%s826_s3 + $0x30] sm:$0xff]  ;;  %v653_v46 = vmov 0.0|0.0  }
  0x92   :  { %v44_v43 = vpop.permute.xlu0 %43  ;;  %v135_v2 = vadd.f32 %v127_v59, %v83_v62  ;;  %595 = vmatprep.subr.bf16.mxu1 %v653_v46 }
  0x93   :  { %v81_v47 = vmul.f32 %v79_v42, %v44_v43  ;;  %v209_v43 = vld [vmem:[%s826_s3 + $0x28] sm:$0xff] }
  0x94   :  { %v151_v45 = vpop.permute.xlu1 %150 }
  0x95   :  { %v188_v52 = vadd.f32 %v151_v45, %v132_v50  ;;  %v133_v53 = vadd.f32 %v125_v49, %v81_v47  ;;  %v211_v45 = vld [vmem:[%s826_s3 + $0x38] sm:$0xff]  ;;  %v655_v47 = vmov 0.0  }
  0x96   :  { %v49_v48 = vpop.permute.xlu0 %48  ;;  %576 = vmatprep.mubr.msk.f32.mxu1 %vm654_vm1, %v655_v47 }
  0x97   :  { %v196_v57 = vmax.f32 %v188_v52, 0.0  ;;  %v82_v63 = vmul.f32 %v79_v42, %v49_v48 }
  0x98   :  { %v59_v51 = vpop.permute.xlu1 %58 }
  0x99   :  { %v134_v4 = vadd.f32 %v126_v61, %v82_v63  ;;  %v84_v15 = vmul.f32 %v79_v42, %v59_v51 }
  0x9a   :  { %v156_v54 = vpop.permute.xlu0 %155 }
  0x9b   :  { %v189_v55 = vadd.f32 %v156_v54, %v133_v53  ;;  %v136_v20 = vadd.f32 %v128_v14, %v84_v15 }
  0x9c   :  { %v64_v56 = vpop.permute.xlu1 %63 }
  0x9d   :  { %v197_v58 = vmax.f32 %v189_v55, 0.0  ;;  %v85_v13 = vmul.f32 %v79_v42, %v64_v56 }
  0x9e   :  { %v166_v1 = vpop.permute.xlu0 %165 }
  0x9f   :  { %v579_v60 = vpack.c.bf16 %v197_v58, %v196_v57  ;;  %v191_v3 = vadd.f32 %v166_v1, %v135_v2 }
  0xa1   :  { %v110_v0 = vpop.permute.xlu1 %109  ;;  %580 = vmatprep.subr.bf16.mxu0 %v579_v60  ;;  %v199_v7 = vmax.f32 %v191_v3, 0.0 }
  0xa2   :  { %582 = vmatpush3.bf16.msra.mxu0 %v579_v60  ;;  %v129_v12 = vmul.f32 %v123_v41, %v110_v0  ;;  %v176_v18 = vpop.permute.xlu0 %175 }
  0xa4   :  { %v137_v16 = vadd.f32 %v129_v12, %v85_v13 }
  0xa6   :  { %v161_v5 = vpop.permute.xlu1 %160  ;;  %v193_v19 = vadd.f32 %v176_v18, %v137_v16  ;;  %v223_v49 = vpop.permute.xlu0 %222 }
  0xa7   :  { %v190_v6 = vadd.f32 %v161_v5, %v134_v4 }
  0xa8   :  { %v201_v25 = vmax.f32 %v193_v19, 0.0 }
  0xa9   :  { %v198_v8 = vmax.f32 %v190_v6, 0.0 }
  0xaa   :  { %v69_v9 = vpop.permute.xlu1 %68  ;;  %v233_v52 = vpop.permute.xlu0 %232 }
  0xab   :  { %v583_v10 = vpack.c.bf16 %v199_v7, %v198_v8  ;;  %v86_v22 = vmul.f32 %v79_v42, %v69_v9 }
  0xad   :  { %584 = vmatprep.subr.bf16.mxu0 %v583_v10  ;;  %v138_v31 = vadd.f32 %v130_v24, %v86_v22 }
  0xae   :  { %v74_v11 = vpop.permute.xlu1 %73  ;;  %586 = vmatpush3.bf16.msra.mxu0 %v583_v10  ;;  %v243_v0 = vpop.permute.xlu0 %242 }
  0xaf   :  { %v87_v29 = vmul.f32 %v79_v42, %v74_v11  ;;  %v208_v42 = vld [vmem:[%s826_s3 + $0x20] sm:$0xff] }
  0xb2   :  { %v253_v12 = vpop.permute.xlu0 %252 }
  0xb3   :  { %v118_v17 = vpop.permute.xlu1 %117 }
  0xb4   :  { %v131_v26 = vmul.f32 %v123_v41, %v118_v17  ;;  %v207_v41 = vld [vmem:[%s826_s3 + $0x18] sm:$0xff] }
  0xb6   :  { %v139_v32 = vadd.f32 %v131_v26, %v87_v29 }
  0xb8   :  { %v171_v21 = vpop.permute.xlu1 %170 }
  0xb9   :  { %v192_v23 = vadd.f32 %v171_v21, %v136_v20  ;;  %v398_v20 = vld [vmem:[%s828_s5] sm:$0x3]  ;;  %v403_v21 = vpop.permute.xlu0 %402 }
  0xbb   :  { %v200_v27 = vmax.f32 %v192_v23, 0.0 }
  0xbc   :  { %v181_v28 = vpop.permute.xlu1 %180 }
  0xbd   :  { %v587_v30 = vpack.c.bf16 %v201_v25, %v200_v27  ;;  %v194_v33 = vadd.f32 %v181_v28, %v138_v31 }
  0xbf   :  { %588 = vmatprep.subr.bf16.mxu0 %v587_v30  ;;  %v202_v37 = vmax.f32 %v194_v33, 0.0 }
  0xc0   :  { %v186_v35 = vpop.permute.xlu1 %185  ;;  %590 = vmatpush3.bf16.msra.mxu0 %v587_v30 }
  0xc1   :  { %v195_v36 = vadd.f32 %v186_v35, %v139_v32 }
  0xc3   :  { %v203_v38 = vmax.f32 %v195_v36, 0.0 }
  0xc4   :  { %v228_v48 = vpop.permute.xlu1 %227 }
  0xc5   :  { %v591_v39 = vpack.c.bf16 %v203_v38, %v202_v37 }
  0xc7   :  { %592 = vmatprep.subr.bf16.mxu0 %v591_v39 }
  0xc8   :  { %594 = vmatpush3.bf16.msra.mxu0 %v591_v39  ;;  %v238_v50 = vpop.permute.xlu1 %237 }
  0xcb   :  { %549 = vmatmul.mubr.msk.f32.vlgmr.msra.gmra.mrb[0].mxu0 %vm260_vm0, %v205_v34 }
  0xcc   :  { %551 = vmatprep.mubr.msk.f32.mxu0 %vm260_vm0, %v206_v40  ;;  %v248_v61 = vpop.permute.xlu1 %247 }
  0xcf   :  { %552 = vmatmul.mubr.msk.f32.gmra.mrb[2].mxu0 %vm260_vm0, %v207_v41 }
  0xd0   :  { %554 = vmatprep.mubr.msk.f32.mxu0 %vm260_vm0, %v208_v42  ;;  %v258_v9 = vpop.permute.xlu1 %257 }
  0xd3   :  { %555 = vmatmul.mubr.msk.f32.gmra.mrb[4].mxu0 %vm260_vm0, %v209_v43 }
  0xd4   :  { %557 = vmatprep.mubr.msk.f32.mxu0 %vm260_vm0, %v210_v44 }
  0xd7   :  { %558 = vmatmul.mubr.msk.f32.gmra.mrb[6].mxu0 %vm260_vm0, %v211_v45 }
 0x19e   :  { %v550_v51 = vpop.f32.mrb[0].mxu0 }
 0x19f   :  { %v357_v53 = vadd.f32 %v550_v51, %v228_v48  ;;  %v351_v54 = vpop.f32.mrb[1].mxu0 }
 0x1a0   :  { %v352_v55 = vadd.f32 %v351_v54, %v223_v49 }
 0x1a1   :  { %v391_v56 = vmax.f32 %v357_v53, 0.0 }
 0x1a2   :  { %v390_v57 = vmax.f32 %v352_v55, 0.0  ;;  %v553_v58 = vpop.f32.mrb[2].mxu0 }
 0x1a3   :  { %v367_v59 = vadd.f32 %v553_v58, %v238_v50  ;;  %v361_v60 = vpop.f32.mrb[3].mxu0 }
 0x1a4   :  { %v362_v62 = vadd.f32 %v361_v60, %v233_v52  ;;  %v596_v63 = vpack.c.bf16 %v391_v56, %v390_v57 }
 0x1a5   :  { %v393_v1 = vmax.f32 %v367_v59, 0.0 }
 0x1a6   :  { %v392_v2 = vmax.f32 %v362_v62, 0.0  ;;  %v556_v3 = vpop.f32.mrb[4].mxu0  ;;  %597 = vmatpush3.bf16.msra.mxu1 %v596_v63 }
 0x1a7   :  { %v377_v4 = vadd.f32 %v556_v3, %v248_v61  ;;  %v371_v5 = vpop.f32.mrb[5].mxu0  ;;  %598 = vmatprep.subr.bf16.mxu1 %v653_v46 }
 0x1a8   :  { %v599_v6 = vpack.c.bf16 %v393_v1, %v392_v2  ;;  %v372_v7 = vadd.f32 %v371_v5, %v243_v0 }
 0x1a9   :  { %v395_v8 = vmax.f32 %v377_v4, 0.0 }
 0x1aa   :  { %v394_v10 = vmax.f32 %v372_v7, 0.0  ;;  %v559_v11 = vpop.f32.mrb[6].mxu0  ;;  %600 = vmatpush3.bf16.msra.mxu1 %v599_v6 }
 0x1ab   :  { %v387_v13 = vadd.f32 %v559_v11, %v258_v9  ;;  %v381_v14 = vpop.f32.mrb[7].mxu0  ;;  %601 = vmatprep.subr.bf16.mxu1 %v653_v46 }
 0x1ac   :  { %v602_v15 = vpack.c.bf16 %v395_v8, %v394_v10  ;;  %v382_v16 = vadd.f32 %v381_v14, %v253_v12 }
 0x1ad   :  { %v397_v17 = vmax.f32 %v387_v13, 0.0 }
 0x1ae   :  { %v396_v18 = vmax.f32 %v382_v16, 0.0  ;;  %603 = vmatpush3.bf16.msra.mxu1 %v602_v15 }
 0x1af   :  { %604 = vmatprep.subr.bf16.mxu1 %v653_v46 }
 0x1b0   :  { %v605_v19 = vpack.c.bf16 %v397_v17, %v396_v18 }
 0x1b2   :  { %606 = vmatpush3.bf16.msra.mxu1 %v605_v19 }
 0x1b5   :  { %577 = vmatmul.mubr.msk.f32.vlgmr.msra.gmra.mrb[0].mxu1 %vm260_vm0, %v398_v20 }
 0x288   :  { %v474_v22 = vpop.f32.mrb[0].mxu1 }
 0x289   :  { %v475_v23 = vadd.f32 %v474_v22, %v403_v21  ;;  %v578_v24 = vpop.f32.mrb[1].mxu1 }
 0x28b   :  { %623 = vtanh.f32 %v475_v23 }
 0x295   :  { %v624_v25 = vpop.eup %623 }
 0x296   :  { %v479_v26 = vmul.f32 7.5, %v624_v25 }
 0x298   :  { %v480_v27 = vadd.f32 -2.5, %v479_v26 }
 0x29a   :  { %v481_v28 = vmul.f32 1.442695, %v480_v27 }
 0x29c   :  { %625 = vpow2.f32 %v481_v28 }
 0x2a6   :  { %v626_v29 = vpop.eup %625 }
 0x2a7   :  { %483 = vst [vmem:[#allocation2] sm:$0x3] %v626_v29 }
 0x2a8   :  { %638 = shalt.err (!%p635_p4)
}
 0x2a9   :  { %s639_s21 = scalar_lea.hbm %s830_s7, 32 }
 0x2aa   :  { %p640_p5 = scmp.ne.s32.totalorder %s830_s7, %s639_s21  ;;  %p643_p6 = scmp.lt.u32.totalorder %s639_s21, %s830_s7 }
 0x2ac   :  { %p645_p7 = pnand %p643_p6, %p640_p5 }
 0x2ae   :  { %648 = shalt.err (!%p645_p7)
}
 0x2af   :  { %493 = dma.vmem_to_hbm [thread:$0]  %s491_s19, 32, %s830_s7, [#allocation3]  }
 0x2b0   :  { %649 = dma.done.wait [#allocation3], 32  }
 0x2b1   :  { %650 = vsyncadd [#allocation3], 4294967264 }
 0x2b2   :  { %497 = vsyncpa [#allocation3], 1 }

</bundles_post_ra>
